<compile_context>
chip_gen: v6e
topology: v6e:2x2x1
jax: 0.10.0
libtpu: 0.0.40
codegen_flags: <defaults>
</compile_context>

<pallas_src>
import functools

import jax
import jax.numpy as jnp
from jax import lax
from jax.experimental import pallas as pl
from jax.experimental.pallas import tpu as pltpu


def _accuracy_per_class_kernel(x_ref, lab_ref, out_ref, *, block_n, n_rows):
    # x_ref:   (bn, C)  logits tile (native dtype)
    # lab_ref: (bn, 1)  int32 labels tile
    # out_ref: (2, C)   float32 accumulator (row 0: sums, row 1: counts);
    #                   resident across the "arbitrary" grid axis.
    s = pl.program_id(0)            # parallel split (per-core partials)
    i = pl.program_id(1)            # reduction step over N tiles
    steps = pl.num_programs(1)

    @pl.when(i == 0)
    def _init():
        out_ref[...] = jnp.zeros_like(out_ref)

    x = x_ref[...]                                   # (bn, C)
    labels = lab_ref[...]                            # (bn, 1) int32
    bn, num_classes = x.shape

    # Global row ids of this tile -> mask tail rows and fully-padded steps.
    linear_step = s * steps + i
    row0 = linear_step * block_n
    row_ids = row0 + lax.broadcasted_iota(jnp.int32, (bn, 1), 0)   # (bn, 1)
    valid = row_ids < n_rows                                       # (bn, 1)

    col = lax.broadcasted_iota(jnp.int32, (bn, num_classes), 1)    # column ids

    # Row-wise argmax with first-occurrence tie-break (matches torch.argmax).
    max_val = jnp.max(x, axis=-1, keepdims=True)                   # (bn, 1)
    is_max = x == max_val                                          # (bn, C)
    argmax = jnp.min(jnp.where(is_max, col, num_classes),
                     axis=-1, keepdims=True)                       # (bn, 1)

    correct = (argmax == labels).astype(jnp.float32)               # (bn, 1)

    # One-hot of labels, masked by row validity -> scatter-add becomes a
    # masked column reduction. Garbage rows (tail / padded steps) contribute 0.
    onehot = jnp.logical_and(labels == col, valid).astype(jnp.float32)  # (bn, C)

    sums = jnp.sum(onehot * correct, axis=0, keepdims=True)        # (1, C)
    cnts = jnp.sum(onehot, axis=0, keepdims=True)                  # (1, C)

    out_ref[0:1, :] += sums
    out_ref[1:2, :] += cnts


def _pick_block_n(n_rows, n_classes, itemsize, requested=None, *,
                  tile_budget_bytes=6 << 20, max_block_rows=2048):
    """Choose an N-tile that fills VMEM (double-buffered) without overflowing it."""
    # VMEM footprint per row: logits lane-padded to 128, labels occupy one
    # lane-padded int32 row.
    lanes_c = 128 * pl.cdiv(n_classes, 128)
    bytes_per_row = lanes_c * itemsize + 128 * 4
    if requested is None:
        requested = min(tile_budget_bytes // bytes_per_row, max_block_rows)
    mult = max(8, 32 // itemsize)            # sublane packing multiple
    if requested >= n_rows:
        return int(n_rows)                   # full-array block is always legal
    return int(max(mult, (requested // mult) * mult))


def accuracy_per_class(inputs, labels, *, block_n=None):
    """inputs: [N, C] float, labels: [N] int -> (sum_by_class[C], counts[C])."""
    N, C = inputs.shape
    itemsize = jnp.dtype(inputs.dtype).itemsize
    lab = labels.astype(jnp.int32).reshape(N, 1)

    block_n = _pick_block_n(N, C, itemsize, block_n)

    total_blocks = pl.cdiv(N, block_n)
    num_splits = 2 if total_blocks >= 2 else 1    # per-core partials on 2-TC chips
    steps = pl.cdiv(total_blocks, num_splits)
    last_block = total_blocks - 1

    def in_map(s, i):
        # Clamp padded trailing steps onto the last real block; their rows are
        # masked out in-kernel via the row-id check.
        return (jnp.minimum(s * steps + i, last_block), 0)

    def out_map(s, i):
        return (s, 0, 0)

    kernel = functools.partial(_accuracy_per_class_kernel,
                               block_n=block_n, n_rows=N)

    partials = pl.pallas_call(
        kernel,
        out_shape=jax.ShapeDtypeStruct((num_splits, 2, C), jnp.float32),
        grid_spec=pltpu.PrefetchScalarGridSpec(
            num_scalar_prefetch=0,
            grid=(num_splits, steps),
            in_specs=[
                pl.BlockSpec((block_n, C), in_map),   # logits, native dtype
                pl.BlockSpec((block_n, 1), in_map),   # labels
            ],
            out_specs=pl.BlockSpec((None, 2, C), out_map),
        ),
        compiler_params=pltpu.CompilerParams(
            dimension_semantics=("parallel", "arbitrary"),
            vmem_limit_bytes=32 * 1024 * 1024,
        ),
    )(inputs, lab)

    totals = partials.sum(axis=0)        # (2, C): sum per-split partials
    return totals[0], totals[1]


def _reference(inputs, labels):
    C = inputs.shape[1]
    classes = jnp.argmax(inputs, axis=1)
    correct = (classes == labels).astype(jnp.float32)
    counts = jnp.zeros((C,), jnp.float32).at[labels].add(jnp.ones_like(correct))
    sums = jnp.zeros((C,), jnp.float32).at[labels].add(correct)
    return sums, counts


if __name__ == "__main__":
    key = jax.random.PRNGKey(0)
    k1, k2, k3, k4 = jax.random.split(key, 4)

    # Test 1: small f32 batch, auto block_n (single full block).
    N1, C1 = 16, 8
    x1 = jax.random.normal(k1, (N1, C1), dtype=jnp.float32)
    y1 = jax.random.randint(k2, (N1,), 0, C1, dtype=jnp.int32)
    s1, c1 = accuracy_per_class(x1, y1)
    jax.block_until_ready((s1, c1))
    rs1, rc1 = _reference(x1, y1)
    assert jnp.allclose(s1, rs1), (s1, rs1)
    assert jnp.allclose(c1, rc1), (c1, rc1)

    # Test 2: bf16 logits, ragged N (tail mask), multi-block + 2-way parallel split.
    N2, C2 = 200, 8
    x2 = jax.random.normal(k3, (N2, C2), dtype=jnp.bfloat16)
    y2 = jax.random.randint(k4, (N2,), 0, C2, dtype=jnp.int32)
    s2, c2 = accuracy_per_class(x2, y2, block_n=48)
    jax.block_until_ready((s2, c2))
    rs2, rc2 = _reference(x2, y2)
    assert jnp.allclose(s2, rs2), (s2, rs2)
    assert jnp.allclose(c2, rc2), (c2, rc2)

    print("KERNEL_OK")
</pallas_src>

<mosaic_0001>
module attributes {stable_mosaic.version = 11 : i64} {
  func.func @_accuracy_per_class_kernel(%arg0: i32, %arg1: i32, %arg2: memref<16x8xf32, #tpu.memory_space<vmem>>, %arg3: memref<16x1xi32, #tpu.memory_space<vmem>>, %arg4: memref<1x2x8xf32, #tpu.memory_space<vmem>>) attributes {dimension_semantics = [#tpu.dimension_semantics<parallel>, #tpu.dimension_semantics<arbitrary>], iteration_bounds = array<i64: 1, 1>, scalar_prefetch = 0 : i64, scratch_operands = 0 : i64, tpu.core_type = #tpu.core_type<tc>, window_params = [{transform_indices = @transform_0, window_bounds = array<i64: 16, 8>}, {transform_indices = @transform_1, window_bounds = array<i64: 16, 1>}, {transform_indices = @transform_2, window_bounds = array<i64: 1, 2, 8>}]} {
    %c0_i32 = arith.constant 0 : i32
    %0 = arith.cmpi eq, %arg1, %c0_i32 : i32
    %1 = arith.extui %0 : i1 to i32
    %c0_i32_0 = arith.constant 0 : i32
    %2 = arith.cmpi ne, %1, %c0_i32_0 : i32
    scf.if %2 {
      %cst_19 = arith.constant 0.000000e+00 : f32
      %49 = vector.broadcast %cst_19 : f32 to vector<2x8xf32>
      %c0_20 = arith.constant 0 : index
      %c0_21 = arith.constant 0 : index
      %c0_22 = arith.constant 0 : index
      %50 = vector.load %arg4[%c0_20, %c0_21, %c0_22] : memref<1x2x8xf32, #tpu.memory_space<vmem>>, vector<1x2x8xf32>
      %51 = vector.shape_cast %50 : vector<1x2x8xf32> to vector<2x8xf32>
      %52 = vector.shape_cast %49 : vector<2x8xf32> to vector<1x2x8xf32>
      tpu.vector_store %arg4[%c0_20, %c0_21, %c0_22], %52 {strides = array<i32>} : memref<1x2x8xf32, #tpu.memory_space<vmem>>, vector<1x2x8xf32>,
    } else {
    }
    %c0 = arith.constant 0 : index
    %c0_1 = arith.constant 0 : index
    %3 = vector.load %arg2[%c0, %c0_1] : memref<16x8xf32, #tpu.memory_space<vmem>>, vector<16x8xf32>
    %c0_2 = arith.constant 0 : index
    %c0_3 = arith.constant 0 : index
    %4 = vector.load %arg3[%c0_2, %c0_3] : memref<16x1xi32, #tpu.memory_space<vmem>>, vector<16x1xi32>
    %c1_i32 = arith.constant 1 : i32
    %5 = arith.muli %arg0, %c1_i32 : i32
    %6 = arith.addi %5, %arg1 : i32
    %c16_i32 = arith.constant 16 : i32
    %7 = arith.muli %6, %c16_i32 : i32
    %8 = tpu.iota {dimensions = array<i32: 0>} : vector<16x1xi32>
    %9 = vector.broadcast %7 : i32 to vector<16x1xi32>
    %10 = arith.addi %9, %8 : vector<16x1xi32>
    %c16_i32_4 = arith.constant 16 : i32
    %11 = vector.broadcast %c16_i32_4 : i32 to vector<16x1xi32>
    %12 = arith.cmpi slt, %10, %11 : vector<16x1xi32>
    %13 = tpu.iota {dimensions = array<i32: 1>} : vector<16x8xi32>
    %cst = arith.constant dense<0xFF800000> : vector<16xf32>
    %14 = vector.multi_reduction <maximumf>, %3, %cst [1] : vector<16x8xf32> to vector<16xf32>
    %15 = vector.shape_cast %14 : vector<16xf32> to vector<16x1xf32>
    %16 = vector.broadcast %15 : vector<16x1xf32> to vector<16x8xf32>
    %17 = arith.cmpf oeq, %3, %16 : vector<16x8xf32>
    %c8_i32 = arith.constant 8 : i32
    %18 = vector.broadcast %c8_i32 : i32 to vector<16x8xi32>
    %19 = arith.select %17, %13, %18 : vector<16x8xi1>, vector<16x8xi32>
    %cst_5 = arith.constant dense<2147483647> : vector<16xi32>
    %20 = vector.multi_reduction <minsi>, %19, %cst_5 [1] : vector<16x8xi32> to vector<16xi32>
    %21 = vector.shape_cast %20 : vector<16xi32> to vector<16x1xi32>
    %22 = arith.cmpi eq, %21, %4 : vector<16x1xi32>
    %23 = arith.extui %22 : vector<16x1xi1> to vector<16x1xi32>
    %24 = arith.sitofp %23 : vector<16x1xi32> to vector<16x1xf32>
    %25 = vector.broadcast %4 : vector<16x1xi32> to vector<16x8xi32>
    %26 = arith.cmpi eq, %25, %13 : vector<16x8xi32>
    %27 = vector.broadcast %12 : vector<16x1xi1> to vector<16x8xi1>
    %28 = arith.andi %26, %27 : vector<16x8xi1>
    %29 = arith.extui %28 : vector<16x8xi1> to vector<16x8xi32>
    %30 = arith.sitofp %29 : vector<16x8xi32> to vector<16x8xf32>
    %31 = vector.broadcast %24 : vector<16x1xf32> to vector<16x8xf32>
    %32 = arith.mulf %30, %31 : vector<16x8xf32>
    %cst_6 = arith.constant dense<0.000000e+00> : vector<8xf32>
    %33 = vector.multi_reduction <add>, %32, %cst_6 [0] : vector<16x8xf32> to vector<8xf32>
    %34 = vector.shape_cast %33 : vector<8xf32> to vector<1x8xf32>
    %cst_7 = arith.constant dense<0.000000e+00> : vector<8xf32>
    %35 = vector.multi_reduction <add>, %30, %cst_7 [0] : vector<16x8xf32> to vector<8xf32>
    %36 = vector.shape_cast %35 : vector<8xf32> to vector<1x8xf32>
    %c0_8 = arith.constant 0 : index
    %c0_9 = arith.constant 0 : index
    %c0_10 = arith.constant 0 : index
    %37 = vector.load %arg4[%c0_8, %c0_9, %c0_10] : memref<1x2x8xf32, #tpu.memory_space<vmem>>, vector<1x1x8xf32>
    %38 = vector.shape_cast %37 : vector<1x1x8xf32> to vector<1x8xf32>
    %39 = arith.addf %38, %34 : vector<1x8xf32>
    %c0_11 = arith.constant 0 : index
    %c0_12 = arith.constant 0 : index
    %c0_13 = arith.constant 0 : index
    %40 = vector.load %arg4[%c0_11, %c0_12, %c0_13] : memref<1x2x8xf32, #tpu.memory_space<vmem>>, vector<1x1x8xf32>
    %41 = vector.shape_cast %40 : vector<1x1x8xf32> to vector<1x8xf32>
    %42 = vector.shape_cast %39 : vector<1x8xf32> to vector<1x1x8xf32>
    tpu.vector_store %arg4[%c0_11, %c0_12, %c0_13], %42 {strides = array<i32>} : memref<1x2x8xf32, #tpu.memory_space<vmem>>, vector<1x1x8xf32>,
    %c0_14 = arith.constant 0 : index
    %c1 = arith.constant 1 : index
    %c0_15 = arith.constant 0 : index
    %43 = vector.load %arg4[%c0_14, %c1, %c0_15] : memref<1x2x8xf32, #tpu.memory_space<vmem>>, vector<1x1x8xf32>
    %44 = vector.shape_cast %43 : vector<1x1x8xf32> to vector<1x8xf32>
    %45 = arith.addf %44, %36 : vector<1x8xf32>
    %c0_16 = arith.constant 0 : index
    %c1_17 = arith.constant 1 : index
    %c0_18 = arith.constant 0 : index
    %46 = vector.load %arg4[%c0_16, %c1_17, %c0_18] : memref<1x2x8xf32, #tpu.memory_space<vmem>>, vector<1x1x8xf32>
    %47 = vector.shape_cast %46 : vector<1x1x8xf32> to vector<1x8xf32>
    %48 = vector.shape_cast %45 : vector<1x8xf32> to vector<1x1x8xf32>
    tpu.vector_store %arg4[%c0_16, %c1_17, %c0_18], %48 {strides = array<i32>} : memref<1x2x8xf32, #tpu.memory_space<vmem>>, vector<1x1x8xf32>,
    return
  }
  func.func @transform_0(%arg0: i32, %arg1: i32) -> (i32, i32) {
    %c1_i32 = arith.constant 1 : i32
    %0 = arith.muli %arg0, %c1_i32 : i32
    %1 = arith.addi %0, %arg1 : i32
    %c0_i32 = arith.constant 0 : i32
    %2 = arith.minsi %1, %c0_i32 : i32
    %c0_i32_0 = arith.constant 0 : i32
    %c0_i32_1 = arith.constant 0 : i32
    return %2, %c0_i32_0 : i32, i32
  }
  func.func @transform_1(%arg0: i32, %arg1: i32) -> (i32, i32) {
    %c1_i32 = arith.constant 1 : i32
    %0 = arith.muli %arg0, %c1_i32 : i32
    %1 = arith.addi %0, %arg1 : i32
    %c0_i32 = arith.constant 0 : i32
    %2 = arith.minsi %1, %c0_i32 : i32
    %c0_i32_0 = arith.constant 0 : i32
    %c0_i32_1 = arith.constant 0 : i32
    return %2, %c0_i32_0 : i32, i32
  }
  func.func @transform_2(%arg0: i32, %arg1: i32) -> (i32, i32, i32) {
    %c0_i32 = arith.constant 0 : i32
    %c0_i32_0 = arith.constant 0 : i32
    %c0_i32_1 = arith.constant 0 : i32
    return %arg0, %c0_i32, %c0_i32_0 : i32, i32, i32
  }
}

</mosaic_0001>

<bundles_post_ra>
// kernel: tpu_custom_call.1
= control target key start
LH: loop header
LB: loop body
LE: loop exit
PB: predicated region body
PF: predicated region fallthrough
CT: control target
= control target key end

     0   :  { %vm98_vm0 = vcmask 64512   ;;  %s305_s0 = inlined_call_operand.vmem [shape: f32[16,8], index: 0, kind: input, shape index: {}]   ;;  %s306_s1 = inlined_call_operand.vmem [shape: s32[16,1], index: 1, kind: input, shape index: {}]   ;;  %s307_s2 = inlined_call_operand.hbm [shape: f32[1,2,8], index: 2, kind: output, shape index: {}]  }
   0x1   :  { %v82_v0 = vld [vmem:[%s305_s0] sm:$0xff]  ;;  %v83_v1 = vld [vmem:[%s305_s0 + $0x8] sm:$0xff] }
   0x2   :  { %7 = vsyncpa [#allocation3], 0  ;;  %v99_v2 = vsel %vm98_vm0, %v82_v0, -inf  ;;  %v102_v3 = vsel %vm98_vm0, %v83_v1, -inf  ;;  %v96_v4 = vlaneseq  ;;  %v262_v24 = vmov 0   ;;  %v85_v25 = vld [vmem:[%s306_s1 + $0x8] sm:$0xff] }
   0x3   :  { %100 = vmax.xlane.f32.xlu0 %v99_v2  ;;  %234 = vset.pattern.permute.xlu1 %v262_v24  ;;  %v84_v26 = vld [vmem:[%s306_s1] sm:$0xff]  ;;  %vm80_vm6 = vcmask 58368   ;;  %v263_v39 = vmov 0.0   ;;  %vm195_vm10 = vcmask 57344   ;;  %s264_s1 = smov [#allocation2]  }
   0x4   :  { %v97_v5 = vand.u32 127, %v96_v4  ;;  %233 = vset.pattern.permute.xlu0 %v262_v24  ;;  %81 = vst.msk [vmem:[#allocation2] sm:$0x3] %vm80_vm6, %v263_v39  ;;  %s206_s16 = sshll.u32 %s264_s1, 4  ;;  %s207_s16 = int_to_ptr.vmem [resolvable:$true] %s206_s16 }
   0x5   :  { %s240_s17 = scalar_lea.vmem %s207_s16, 32  ;;  %p245_p1 = scmp.lt.s32.totalorder %s207_s16, %s207_s16 }
   0x6   :  { %p241_p0 = scmp.ne.s32.totalorder %s207_s16, %s240_s17  ;;  %p246_p2 = scmp.lt.s32.totalorder %s240_s17, %s240_s17 }
   0x7   :  { %103 = vmax.xlane.f32.xlu0 %v102_v3 }
   0x8   :  { %p247_p3 = por %p246_p2, %p245_p1 }
   0xa   :  { %p248_p4 = pnand %p247_p3, %p241_p0 }
   0xb   :  { %v197_v53 = vld [vmem:[#allocation2 + $0x1] sm:$0x1] }
  0x8c   :  { %v101_v6 = vpop.xlane.xlu0 %100 }
  0x8d   :  { %vm105_vm1 = vcmp.eq.f32.partialorder %v82_v0, %v101_v6 }
  0x8e   :  { %v107_v7 = vsel %vm105_vm1, %v97_v5, 8 }
  0x8f   :  { %v109_v8 = vsel %vm98_vm0, %v107_v7, 2147483647 }
  0x90   :  { %v104_v9 = vpop.xlane.xlu0 %103  ;;  %v111_v10 = vshra.s32 %v109_v8, 16  ;;  %v110_v16 = vand.u32 65535, %v109_v8 }
  0x91   :  { %vm106_vm2 = vcmp.eq.f32.partialorder %v83_v1, %v104_v9 }
  0x92   :  { %v108_v11 = vsel %vm106_vm2, %v97_v5, 8  ;;  %v113_v12 = vcvt.s32.f32 %v111_v10  ;;  %v112_v18 = vcvt.s32.f32 %v110_v16 }
  0x93   :  { %v124_v13 = vsel %vm98_vm0, %v108_v11, 2147483647 }
  0x94   :  { %114 = vmin.xlane.f32.xlu1 %v113_v12  ;;  %v126_v14 = vshra.s32 %v124_v13, 16  ;;  %v125_v19 = vand.u32 65535, %v124_v13 }
  0x96   :  { %v128_v15 = vcvt.s32.f32 %v126_v14  ;;  %v127_v22 = vcvt.s32.f32 %v125_v19 }
  0x98   :  { %129 = vmin.xlane.f32.xlu1 %v128_v15 }
 0x11d   :  { %v115_v17 = vpop.xlane.xlu1 %114 }
 0x11e   :  { %vm116_vm3 = vcmp.eq.f32.partialorder %v113_v12, %v115_v17  ;;  %v121_v27 = vcvt.f32.s32 %v115_v17 }
 0x11f   :  { %v117_v20 = vsel %vm116_vm3, %v112_v18, inf }
 0x120   :  { %118 = vmin.xlane.f32.xlu0 %v117_v20  ;;  %v122_v29 = vshll.u32 %v121_v27, 16 }
 0x121   :  { %v130_v21 = vpop.xlane.xlu1 %129 }
 0x122   :  { %vm131_vm4 = vcmp.eq.f32.partialorder %v128_v15, %v130_v21  ;;  %v136_v30 = vcvt.f32.s32 %v130_v21 }
 0x123   :  { %v132_v23 = vsel %vm131_vm4, %v127_v22, inf }
 0x124   :  { %133 = vmin.xlane.f32.xlu1 %v132_v23  ;;  %v137_v34 = vshll.u32 %v136_v30, 16 }
 0x135   :  { %149 = vperm.xlu1 %234, %v85_v25  }
 0x136   :  { %146 = vperm.xlu0 %233, %v84_v26  }
 0x1a9   :  { %v119_v28 = vpop.xlane.xlu0 %118 }
 0x1aa   :  { %v120_v31 = vcvt.f32.s32 %v119_v28 }
 0x1ac   :  { %v123_v32 = vadd.s32 %v122_v29, %v120_v31 }
 0x1ad   :  { %v134_v33 = vpop.xlane.xlu1 %133 }
 0x1ae   :  { %v135_v35 = vcvt.f32.s32 %v134_v33  ;;  %vm139_vm5 = vcmp.eq.s32.totalorder %v123_v32, %v84_v26 }
 0x1af   :  { %v226_v40 = vsel %vm139_vm5, 1.0, %v263_v39 }
 0x1b0   :  { %v138_v36 = vadd.s32 %v137_v34, %v135_v35 }
 0x1b1   :  { %v150_v37 = vpop.permute.xlu1 %149  ;;  %v147_v38 = vpop.permute.xlu0 %146 }
 0x1b2   :  { %vm140_vm7 = vcmp.eq.s32.totalorder %v138_v36, %v85_v25  ;;  %vm152_vm8 = vcmp.eq.s32.totalorder %v150_v37, %v97_v5  ;;  %vm151_vm9 = vcmp.eq.s32.totalorder %v147_v38, %v97_v5  ;;  %v193_v5 = vld [vmem:[#allocation2] sm:$0x1] }
 0x1b3   :  { %v227_v41 = vsel %vm140_vm7, 1.0, %v263_v39  ;;  %v229_v42 = vsel %vm152_vm8, 1.0, %v263_v39  ;;  %v228_v43 = vsel %vm151_vm9, 1.0, %v263_v39 }
 0x1b4   :  { %v235_v44 = vpack.i.bf16 %v227_v41, %v226_v40  ;;  %v185_v45 = vsel %vm98_vm0, %v229_v42, 0.0  ;;  %v184_v46 = vsel %vm98_vm0, %v228_v43, 0.0 }
 0x1b5   :  { %v186_v47 = vadd.f32 %v185_v45, %v184_v46 }
 0x1b6   :  { %236 = vperm.xlu1 %234, %v235_v44  }
 0x1b7   :  { %v187_v48 = vrot.slane %v186_v47, 4 }
 0x1b9   :  { %v188_v49 = vadd.f32 %v187_v48, %v186_v47 }
 0x1bb   :  { %v189_v50 = vrot.slane %v188_v49, 2 }
 0x1bd   :  { %v190_v51 = vadd.f32 %v189_v50, %v188_v49 }
 0x1bf   :  { %v191_v52 = vrot.slane %v190_v51, 1 }
 0x1c1   :  { %v192_v54 = vadd.f32 %v191_v52, %v190_v51 }
 0x1c3   :  { %v198_v55 = vadd.f32 %v197_v53, %v192_v54 }
 0x1c5   :  { %199 = vst.msk [vmem:[#allocation2 + $0x1] sm:$0x1] %vm195_vm10, %v198_v55 }
 0x231   :  { %v237_v56 = vpop.permute.xlu1 %236 }
 0x232   :  { %v239_v57 = vunpack.i.h.bf16 %v237_v56  ;;  %v238_v58 = vunpack.i.l.bf16 %v237_v56 }
 0x234   :  { %v174_v59 = vmul.f32 %v239_v57, %v229_v42  ;;  %v173_v60 = vmul.f32 %v238_v58, %v228_v43 }
 0x236   :  { %v176_v61 = vsel %vm98_vm0, %v174_v59, 0.0  ;;  %v175_v62 = vsel %vm98_vm0, %v173_v60, 0.0 }
 0x237   :  { %v177_v63 = vadd.f32 %v176_v61, %v175_v62 }
 0x239   :  { %v178_v0 = vrot.slane %v177_v63, 4 }
 0x23b   :  { %v179_v1 = vadd.f32 %v178_v0, %v177_v63 }
 0x23d   :  { %v180_v2 = vrot.slane %v179_v1, 2 }
 0x23f   :  { %v181_v3 = vadd.f32 %v180_v2, %v179_v1 }
 0x241   :  { %v182_v4 = vrot.slane %v181_v3, 1 }
 0x243   :  { %v183_v6 = vadd.f32 %v182_v4, %v181_v3 }
 0x245   :  { %v194_v7 = vadd.f32 %v193_v5, %v183_v6 }
 0x247   :  { %196 = vst.msk [vmem:[#allocation2] sm:$0x1] %vm195_vm10, %v194_v7 }
 0x248   :  { %251 = shalt.err (!%p248_p4)
}
 0x249   :  { %209 = dma.vmem_to_hbm [thread:$0]  %s207_s16, 32, %s307_s2, [#allocation3]  }
 0x24a   :  { %260 = dma.done.wait [#allocation3], 32  }
 0x24b   :  { %261 = vsyncadd [#allocation3], 4294967264 }
 0x24c   :  { %213 = vsyncpa [#allocation3], 1 }

</bundles_post_ra>
